<compile_context>
chip_gen: v7x
topology: tpu7x:2x2x1
jax: 0.10.0
libtpu: 0.0.40
codegen_flags: <defaults>
</compile_context>

<pallas_src>
import math

import jax
import jax.numpy as jnp
from jax import lax
from jax.experimental import pallas as pl
from jax.experimental.pallas import tpu as pltpu


def _toy_model_kernel(x_ref, w_ref, b_ref, o_ref):
    # x_ref: (B, I, F), w_ref: (I, F, H), b_ref: (I, 1, F), o_ref: (B, I, F)
    num_instances = w_ref.shape[0]

    # Statically unrolled loop over instances (I is tiny); two small MXU dots,
    # bias add and ReLU per instance — all in one grid step, all in VMEM.
    for i in range(num_instances):
        x_i = x_ref[:, i, :]                                   # (B, F)
        w_i = w_ref[i]                                         # (F, H)

        hidden = jnp.dot(x_i, w_i,
                         preferred_element_type=jnp.float32)   # (B, H)

        # hidden @ W_i^T without materializing the transpose:
        # contract axis 1 (H) of hidden with axis 1 (H) of W_i -> (B, F).
        out = lax.dot_general(
            hidden, w_i,
            dimension_numbers=(((1,), (1,)), ((), ())),
            preferred_element_type=jnp.float32)                # (B, F)

        out = out + b_ref[i]                                   # (1, F) broadcast
        o_ref[:, i, :] = jnp.maximum(out, 0.0).astype(o_ref.dtype)


def toy_model_forward(features, W, b_final):
    """features: (B, I, F), W: (I, F, H), b_final: (I, F) -> (B, I, F)."""
    B, I, F = features.shape
    _, _, H = W.shape

    b3 = b_final.reshape(I, 1, F)   # contiguous reshape (no data movement)

    out = pl.pallas_call(
        _toy_model_kernel,
        out_shape=jax.ShapeDtypeStruct((B, I, F), features.dtype),
        grid_spec=pltpu.PrefetchScalarGridSpec(
            num_scalar_prefetch=0,
            grid=(1,),   # single step: whole arrays resident in VMEM
            in_specs=[
                pl.BlockSpec((B, I, F), lambda i: (0, 0, 0)),   # features
                pl.BlockSpec((I, F, H), lambda i: (0, 0, 0)),   # W
                pl.BlockSpec((I, 1, F), lambda i: (0, 0, 0)),   # b_final
            ],
            out_specs=pl.BlockSpec((B, I, F), lambda i: (0, 0, 0)),
        ),
        compiler_params=pltpu.CompilerParams(
            dimension_semantics=("arbitrary",),
        ),
    )(features, W, b3)

    return out


def reference_forward(features, W, b_final):
    # Pure-JAX reference matching the PyTorch semantics exactly.
    hidden = jnp.einsum("bif,ifh->bih", features, W)
    out = jnp.einsum("bih,ifh->bif", hidden, W)
    out = out + b_final[None, :, :]
    return jnp.maximum(out, 0.0)


if __name__ == "__main__":
    # Small shapes consistent with the module.
    num_features = 32
    num_hidden = 8
    num_instances = 5
    batch = 4

    key = jax.random.PRNGKey(0)
    k_w, k_x = jax.random.split(key)

    # Deterministic xavier_normal_ init for W of shape (I, F, H):
    # PyTorch fan_in = F * H, fan_out = I * H (dims > 2 use receptive field = prod of trailing dims).
    fan_in = num_features * num_hidden
    fan_out = num_instances * num_hidden
    std = math.sqrt(2.0 / (fan_in + fan_out))
    W = std * jax.random.normal(
        k_w, (num_instances, num_features, num_hidden), dtype=jnp.float32
    )
    b_final = jnp.zeros((num_instances, num_features), dtype=jnp.float32)

    # Example input: features in [0, 1) like generate_data would produce (without sparsity mask).
    features = jax.random.uniform(
        k_x, (batch, num_instances, num_features), dtype=jnp.float32
    )

    out = toy_model_forward(features, W, b_final)
    out = jax.block_until_ready(out)

    ref = reference_forward(features, W, b_final)
    assert out.shape == (batch, num_instances, num_features)
    assert jnp.allclose(out, ref, atol=1e-5, rtol=1e-5)

    print("KERNEL_OK")
</pallas_src>

<mosaic_0001>
module attributes {stable_mosaic.version = 11 : i64} {
  func.func @_toy_model_kernel(%arg0: i32, %arg1: memref<4x5x32xf32, #tpu.memory_space<vmem>>, %arg2: memref<5x32x8xf32, #tpu.memory_space<vmem>>, %arg3: memref<5x1x32xf32, #tpu.memory_space<vmem>>, %arg4: memref<4x5x32xf32, #tpu.memory_space<vmem>>) attributes {dimension_semantics = [#tpu.dimension_semantics<arbitrary>], iteration_bounds = array<i64: 1>, scalar_prefetch = 0 : i64, scratch_operands = 0 : i64, tpu.core_type = #tpu.core_type<tc>, window_params = [{pipeline_mode = #tpu.pipeline_mode<synchronous>, transform_indices = @transform_0, window_bounds = array<i64: 4, 5, 32>}, {pipeline_mode = #tpu.pipeline_mode<synchronous>, transform_indices = @transform_1, window_bounds = array<i64: 5, 32, 8>}, {pipeline_mode = #tpu.pipeline_mode<synchronous>, transform_indices = @transform_2, window_bounds = array<i64: 5, 1, 32>}, {pipeline_mode = #tpu.pipeline_mode<synchronous>, transform_indices = @transform_3, window_bounds = array<i64: 4, 5, 32>}]} {
    %c0 = arith.constant 0 : index
    %c0_0 = arith.constant 0 : index
    %c0_1 = arith.constant 0 : index
    %0 = vector.load %arg1[%c0, %c0_0, %c0_1] : memref<4x5x32xf32, #tpu.memory_space<vmem>>, vector<4x1x32xf32>
    %1 = vector.shape_cast %0 : vector<4x1x32xf32> to vector<4x32xf32>
    %c0_2 = arith.constant 0 : index
    %c0_3 = arith.constant 0 : index
    %c0_4 = arith.constant 0 : index
    %2 = vector.load %arg2[%c0_2, %c0_3, %c0_4] : memref<5x32x8xf32, #tpu.memory_space<vmem>>, vector<1x32x8xf32>
    %3 = vector.shape_cast %2 : vector<1x32x8xf32> to vector<32x8xf32>
    %cst = arith.constant dense<0.000000e+00> : vector<4x8xf32>
    %4 = tpu.matmul %1, %3, %cst {dimension_numbers = #tpu.dot_dimension_numbers<[1], [0], [0], [1], [0, 0, 1, 1], [], []>} : vector<4x32xf32>, vector<32x8xf32>, vector<4x8xf32> -> vector<4x8xf32>
    %cst_5 = arith.constant dense<0.000000e+00> : vector<4x32xf32>
    %5 = tpu.matmul %4, %3, %cst_5 {dimension_numbers = #tpu.dot_dimension_numbers<[1], [1], [0], [0], [0, 0, 1, 0], [], []>} : vector<4x8xf32>, vector<32x8xf32>, vector<4x32xf32> -> vector<4x32xf32>
    %c0_6 = arith.constant 0 : index
    %c0_7 = arith.constant 0 : index
    %c0_8 = arith.constant 0 : index
    %6 = vector.load %arg3[%c0_6, %c0_7, %c0_8] : memref<5x1x32xf32, #tpu.memory_space<vmem>>, vector<1x1x32xf32>
    %7 = vector.shape_cast %6 : vector<1x1x32xf32> to vector<1x32xf32>
    %8 = vector.broadcast %7 : vector<1x32xf32> to vector<4x32xf32>
    %9 = arith.addf %5, %8 : vector<4x32xf32>
    %cst_9 = arith.constant 0.000000e+00 : f32
    %10 = vector.broadcast %cst_9 : f32 to vector<4x32xf32>
    %11 = arith.maximumf %9, %10 : vector<4x32xf32>
    %c0_10 = arith.constant 0 : index
    %c0_11 = arith.constant 0 : index
    %c0_12 = arith.constant 0 : index
    %12 = vector.load %arg4[%c0_10, %c0_11, %c0_12] : memref<4x5x32xf32, #tpu.memory_space<vmem>>, vector<4x1x32xf32>
    %13 = vector.shape_cast %12 : vector<4x1x32xf32> to vector<4x32xf32>
    %14 = vector.shape_cast %11 : vector<4x32xf32> to vector<4x1x32xf32>
    tpu.vector_store %arg4[%c0_10, %c0_11, %c0_12], %14 {strides = array<i32>} : memref<4x5x32xf32, #tpu.memory_space<vmem>>, vector<4x1x32xf32>,
    %c0_13 = arith.constant 0 : index
    %c1 = arith.constant 1 : index
    %c0_14 = arith.constant 0 : index
    %15 = vector.load %arg1[%c0_13, %c1, %c0_14] : memref<4x5x32xf32, #tpu.memory_space<vmem>>, vector<4x1x32xf32>
    %16 = vector.shape_cast %15 : vector<4x1x32xf32> to vector<4x32xf32>
    %c1_15 = arith.constant 1 : index
    %c0_16 = arith.constant 0 : index
    %c0_17 = arith.constant 0 : index
    %17 = vector.load %arg2[%c1_15, %c0_16, %c0_17] : memref<5x32x8xf32, #tpu.memory_space<vmem>>, vector<1x32x8xf32>
    %18 = vector.shape_cast %17 : vector<1x32x8xf32> to vector<32x8xf32>
    %cst_18 = arith.constant dense<0.000000e+00> : vector<4x8xf32>
    %19 = tpu.matmul %16, %18, %cst_18 {dimension_numbers = #tpu.dot_dimension_numbers<[1], [0], [0], [1], [0, 0, 1, 1], [], []>} : vector<4x32xf32>, vector<32x8xf32>, vector<4x8xf32> -> vector<4x8xf32>
    %cst_19 = arith.constant dense<0.000000e+00> : vector<4x32xf32>
    %20 = tpu.matmul %19, %18, %cst_19 {dimension_numbers = #tpu.dot_dimension_numbers<[1], [1], [0], [0], [0, 0, 1, 0], [], []>} : vector<4x8xf32>, vector<32x8xf32>, vector<4x32xf32> -> vector<4x32xf32>
    %c1_20 = arith.constant 1 : index
    %c0_21 = arith.constant 0 : index
    %c0_22 = arith.constant 0 : index
    %21 = vector.load %arg3[%c1_20, %c0_21, %c0_22] : memref<5x1x32xf32, #tpu.memory_space<vmem>>, vector<1x1x32xf32>
    %22 = vector.shape_cast %21 : vector<1x1x32xf32> to vector<1x32xf32>
    %23 = vector.broadcast %22 : vector<1x32xf32> to vector<4x32xf32>
    %24 = arith.addf %20, %23 : vector<4x32xf32>
    %cst_23 = arith.constant 0.000000e+00 : f32
    %25 = vector.broadcast %cst_23 : f32 to vector<4x32xf32>
    %26 = arith.maximumf %24, %25 : vector<4x32xf32>
    %c0_24 = arith.constant 0 : index
    %c1_25 = arith.constant 1 : index
    %c0_26 = arith.constant 0 : index
    %27 = vector.load %arg4[%c0_24, %c1_25, %c0_26] : memref<4x5x32xf32, #tpu.memory_space<vmem>>, vector<4x1x32xf32>
    %28 = vector.shape_cast %27 : vector<4x1x32xf32> to vector<4x32xf32>
    %29 = vector.shape_cast %26 : vector<4x32xf32> to vector<4x1x32xf32>
    tpu.vector_store %arg4[%c0_24, %c1_25, %c0_26], %29 {strides = array<i32>} : memref<4x5x32xf32, #tpu.memory_space<vmem>>, vector<4x1x32xf32>,
    %c0_27 = arith.constant 0 : index
    %c2 = arith.constant 2 : index
    %c0_28 = arith.constant 0 : index
    %30 = vector.load %arg1[%c0_27, %c2, %c0_28] : memref<4x5x32xf32, #tpu.memory_space<vmem>>, vector<4x1x32xf32>
    %31 = vector.shape_cast %30 : vector<4x1x32xf32> to vector<4x32xf32>
    %c2_29 = arith.constant 2 : index
    %c0_30 = arith.constant 0 : index
    %c0_31 = arith.constant 0 : index
    %32 = vector.load %arg2[%c2_29, %c0_30, %c0_31] : memref<5x32x8xf32, #tpu.memory_space<vmem>>, vector<1x32x8xf32>
    %33 = vector.shape_cast %32 : vector<1x32x8xf32> to vector<32x8xf32>
    %cst_32 = arith.constant dense<0.000000e+00> : vector<4x8xf32>
    %34 = tpu.matmul %31, %33, %cst_32 {dimension_numbers = #tpu.dot_dimension_numbers<[1], [0], [0], [1], [0, 0, 1, 1], [], []>} : vector<4x32xf32>, vector<32x8xf32>, vector<4x8xf32> -> vector<4x8xf32>
    %cst_33 = arith.constant dense<0.000000e+00> : vector<4x32xf32>
    %35 = tpu.matmul %34, %33, %cst_33 {dimension_numbers = #tpu.dot_dimension_numbers<[1], [1], [0], [0], [0, 0, 1, 0], [], []>} : vector<4x8xf32>, vector<32x8xf32>, vector<4x32xf32> -> vector<4x32xf32>
    %c2_34 = arith.constant 2 : index
    %c0_35 = arith.constant 0 : index
    %c0_36 = arith.constant 0 : index
    %36 = vector.load %arg3[%c2_34, %c0_35, %c0_36] : memref<5x1x32xf32, #tpu.memory_space<vmem>>, vector<1x1x32xf32>
    %37 = vector.shape_cast %36 : vector<1x1x32xf32> to vector<1x32xf32>
    %38 = vector.broadcast %37 : vector<1x32xf32> to vector<4x32xf32>
    %39 = arith.addf %35, %38 : vector<4x32xf32>
    %cst_37 = arith.constant 0.000000e+00 : f32
    %40 = vector.broadcast %cst_37 : f32 to vector<4x32xf32>
    %41 = arith.maximumf %39, %40 : vector<4x32xf32>
    %c0_38 = arith.constant 0 : index
    %c2_39 = arith.constant 2 : index
    %c0_40 = arith.constant 0 : index
    %42 = vector.load %arg4[%c0_38, %c2_39, %c0_40] : memref<4x5x32xf32, #tpu.memory_space<vmem>>, vector<4x1x32xf32>
    %43 = vector.shape_cast %42 : vector<4x1x32xf32> to vector<4x32xf32>
    %44 = vector.shape_cast %41 : vector<4x32xf32> to vector<4x1x32xf32>
    tpu.vector_store %arg4[%c0_38, %c2_39, %c0_40], %44 {strides = array<i32>} : memref<4x5x32xf32, #tpu.memory_space<vmem>>, vector<4x1x32xf32>,
    %c0_41 = arith.constant 0 : index
    %c3 = arith.constant 3 : index
    %c0_42 = arith.constant 0 : index
    %45 = vector.load %arg1[%c0_41, %c3, %c0_42] : memref<4x5x32xf32, #tpu.memory_space<vmem>>, vector<4x1x32xf32>
    %46 = vector.shape_cast %45 : vector<4x1x32xf32> to vector<4x32xf32>
    %c3_43 = arith.constant 3 : index
    %c0_44 = arith.constant 0 : index
    %c0_45 = arith.constant 0 : index
    %47 = vector.load %arg2[%c3_43, %c0_44, %c0_45] : memref<5x32x8xf32, #tpu.memory_space<vmem>>, vector<1x32x8xf32>
    %48 = vector.shape_cast %47 : vector<1x32x8xf32> to vector<32x8xf32>
    %cst_46 = arith.constant dense<0.000000e+00> : vector<4x8xf32>
    %49 = tpu.matmul %46, %48, %cst_46 {dimension_numbers = #tpu.dot_dimension_numbers<[1], [0], [0], [1], [0, 0, 1, 1], [], []>} : vector<4x32xf32>, vector<32x8xf32>, vector<4x8xf32> -> vector<4x8xf32>
    %cst_47 = arith.constant dense<0.000000e+00> : vector<4x32xf32>
    %50 = tpu.matmul %49, %48, %cst_47 {dimension_numbers = #tpu.dot_dimension_numbers<[1], [1], [0], [0], [0, 0, 1, 0], [], []>} : vector<4x8xf32>, vector<32x8xf32>, vector<4x32xf32> -> vector<4x32xf32>
    %c3_48 = arith.constant 3 : index
    %c0_49 = arith.constant 0 : index
    %c0_50 = arith.constant 0 : index
    %51 = vector.load %arg3[%c3_48, %c0_49, %c0_50] : memref<5x1x32xf32, #tpu.memory_space<vmem>>, vector<1x1x32xf32>
    %52 = vector.shape_cast %51 : vector<1x1x32xf32> to vector<1x32xf32>
    %53 = vector.broadcast %52 : vector<1x32xf32> to vector<4x32xf32>
    %54 = arith.addf %50, %53 : vector<4x32xf32>
    %cst_51 = arith.constant 0.000000e+00 : f32
    %55 = vector.broadcast %cst_51 : f32 to vector<4x32xf32>
    %56 = arith.maximumf %54, %55 : vector<4x32xf32>
    %c0_52 = arith.constant 0 : index
    %c3_53 = arith.constant 3 : index
    %c0_54 = arith.constant 0 : index
    %57 = vector.load %arg4[%c0_52, %c3_53, %c0_54] : memref<4x5x32xf32, #tpu.memory_space<vmem>>, vector<4x1x32xf32>
    %58 = vector.shape_cast %57 : vector<4x1x32xf32> to vector<4x32xf32>
    %59 = vector.shape_cast %56 : vector<4x32xf32> to vector<4x1x32xf32>
    tpu.vector_store %arg4[%c0_52, %c3_53, %c0_54], %59 {strides = array<i32>} : memref<4x5x32xf32, #tpu.memory_space<vmem>>, vector<4x1x32xf32>,
    %c0_55 = arith.constant 0 : index
    %c4 = arith.constant 4 : index
    %c0_56 = arith.constant 0 : index
    %60 = vector.load %arg1[%c0_55, %c4, %c0_56] : memref<4x5x32xf32, #tpu.memory_space<vmem>>, vector<4x1x32xf32>
    %61 = vector.shape_cast %60 : vector<4x1x32xf32> to vector<4x32xf32>
    %c4_57 = arith.constant 4 : index
    %c0_58 = arith.constant 0 : index
    %c0_59 = arith.constant 0 : index
    %62 = vector.load %arg2[%c4_57, %c0_58, %c0_59] : memref<5x32x8xf32, #tpu.memory_space<vmem>>, vector<1x32x8xf32>
    %63 = vector.shape_cast %62 : vector<1x32x8xf32> to vector<32x8xf32>
    %cst_60 = arith.constant dense<0.000000e+00> : vector<4x8xf32>
    %64 = tpu.matmul %61, %63, %cst_60 {dimension_numbers = #tpu.dot_dimension_numbers<[1], [0], [0], [1], [0, 0, 1, 1], [], []>} : vector<4x32xf32>, vector<32x8xf32>, vector<4x8xf32> -> vector<4x8xf32>
    %cst_61 = arith.constant dense<0.000000e+00> : vector<4x32xf32>
    %65 = tpu.matmul %64, %63, %cst_61 {dimension_numbers = #tpu.dot_dimension_numbers<[1], [1], [0], [0], [0, 0, 1, 0], [], []>} : vector<4x8xf32>, vector<32x8xf32>, vector<4x32xf32> -> vector<4x32xf32>
    %c4_62 = arith.constant 4 : index
    %c0_63 = arith.constant 0 : index
    %c0_64 = arith.constant 0 : index
    %66 = vector.load %arg3[%c4_62, %c0_63, %c0_64] : memref<5x1x32xf32, #tpu.memory_space<vmem>>, vector<1x1x32xf32>
    %67 = vector.shape_cast %66 : vector<1x1x32xf32> to vector<1x32xf32>
    %68 = vector.broadcast %67 : vector<1x32xf32> to vector<4x32xf32>
    %69 = arith.addf %65, %68 : vector<4x32xf32>
    %cst_65 = arith.constant 0.000000e+00 : f32
    %70 = vector.broadcast %cst_65 : f32 to vector<4x32xf32>
    %71 = arith.maximumf %69, %70 : vector<4x32xf32>
    %c0_66 = arith.constant 0 : index
    %c4_67 = arith.constant 4 : index
    %c0_68 = arith.constant 0 : index
    %72 = vector.load %arg4[%c0_66, %c4_67, %c0_68] : memref<4x5x32xf32, #tpu.memory_space<vmem>>, vector<4x1x32xf32>
    %73 = vector.shape_cast %72 : vector<4x1x32xf32> to vector<4x32xf32>
    %74 = vector.shape_cast %71 : vector<4x32xf32> to vector<4x1x32xf32>
    tpu.vector_store %arg4[%c0_66, %c4_67, %c0_68], %74 {strides = array<i32>} : memref<4x5x32xf32, #tpu.memory_space<vmem>>, vector<4x1x32xf32>,
    return
  }
  func.func @transform_0(%arg0: i32) -> (i32, i32, i32) {
    %c0_i32 = arith.constant 0 : i32
    %c0_i32_0 = arith.constant 0 : i32
    %c0_i32_1 = arith.constant 0 : i32
    %c0_i32_2 = arith.constant 0 : i32
    return %c0_i32, %c0_i32_0, %c0_i32_1 : i32, i32, i32
  }
  func.func @transform_1(%arg0: i32) -> (i32, i32, i32) {
    %c0_i32 = arith.constant 0 : i32
    %c0_i32_0 = arith.constant 0 : i32
    %c0_i32_1 = arith.constant 0 : i32
    %c0_i32_2 = arith.constant 0 : i32
    return %c0_i32, %c0_i32_0, %c0_i32_1 : i32, i32, i32
  }
  func.func @transform_2(%arg0: i32) -> (i32, i32, i32) {
    %c0_i32 = arith.constant 0 : i32
    %c0_i32_0 = arith.constant 0 : i32
    %c0_i32_1 = arith.constant 0 : i32
    %c0_i32_2 = arith.constant 0 : i32
    return %c0_i32, %c0_i32_0, %c0_i32_1 : i32, i32, i32
  }
  func.func @transform_3(%arg0: i32) -> (i32, i32, i32) {
    %c0_i32 = arith.constant 0 : i32
    %c0_i32_0 = arith.constant 0 : i32
    %c0_i32_1 = arith.constant 0 : i32
    %c0_i32_2 = arith.constant 0 : i32
    return %c0_i32, %c0_i32_0, %c0_i32_1 : i32, i32, i32
  }
}

</mosaic_0001>

<bundles_post_ra>
// kernel: tpu_custom_call.1
= control target key start
LH: loop header
LB: loop body
LE: loop exit
PB: predicated region body
PF: predicated region fallthrough
CT: control target
= control target key end

     0   :  { %v1401_v0 = vmov 0.0|0.0   ;;  %vm1402_vm0 = vmmov 0   ;;  %v1403_v4 = vmov 0.0   ;;  %vm27_vm1 = vcmask 1041409   ;;  %s1748_s1 = inlined_call_operand.vmem [shape: f32[5,32,8], index: 1, kind: input, shape index: {}]   ;;  %s1749_s0 = inlined_call_operand.vmem [shape: f32[4,5,32], index: 0, kind: input, shape index: {}]   ;;  %s1750_s2 = inlined_call_operand.vmem [shape: f32[5,1,32], index: 2, kind: input, shape index: {}]   ;;  %s1751_s3 = inlined_call_operand.vmem [shape: f32[4,5,32], index: 3, kind: output, shape index: {}]  }
   0x1   :  { %1327 = vmatprep.subr.bf16.mxu0 %v1401_v0  ;;  %v18_v1 = vld [vmem:[%s1748_s1] sm:$0xff]  ;;  %v19_v2 = vld [vmem:[%s1748_s1 + $0x8] sm:$0xff]  ;;  %v20_v3 = vld [vmem:[%s1748_s1 + $0x10] sm:$0xff]  ;;  %1225 = vmatprep.mubr.msk.f32.mxu0 %vm1402_vm0, %v1403_v4  ;;  %vm115_vm2 = vcmask 64512   ;;  %vm30_vm3 = vcmask 1042434   ;;  %vm33_vm5 = vcmask 1043459  }
   0x2   :  { %v1328_v5 = vpack.c.bf16 %v19_v2, %v18_v1  ;;  %v21_v6 = vld [vmem:[%s1748_s1 + $0x18] sm:$0xff]  ;;  %v14_v7 = vld [vmem:[%s1749_s0] sm:$0x1]  ;;  %v15_v8 = vld [vmem:[%s1749_s0 + $0x8] sm:$0x1]  ;;  %1333 = vmatprep.subr.bf16.mxu1 %v1401_v0  ;;  %1236 = vmatprep.mubr.msk.f32.mxu1 %vm1402_vm0, %v1403_v4  ;;  %vm35_vm6 = vcmask 261120  }
   0x3   :  { %v16_v9 = vld [vmem:[%s1749_s0 + $0x10] sm:$0x1]  ;;  %v17_v10 = vld [vmem:[%s1749_s0 + $0x18] sm:$0x1]  ;;  %v26_v11 = vrot.slane %v15_v8, 7  ;;  %vm1457_vm4 = vmpackc.low %vm115_vm2, %vm115_vm2  ;;  %v1331_v13 = vpack.c.bf16 %v21_v6, %v20_v3  ;;  %vm231_vm7 = vcmask 253952  }
   0x4   :  { %1329 = vmatpush3.bf16.msra.mxu0 %v1328_v5  ;;  %v29_v14 = vrot.slane %v16_v9, 6  ;;  %v32_v15 = vrot.slane %v17_v10, 5  ;;  %1336 = vmatpush3.bf16.xpose.msk.msra.mxu1 %vm1457_vm4, %v1328_v5  ;;  %v1119_v19 = vld [vmem:[%s1748_s1 + $0x20] sm:$0xff]  ;;  %v1120_v20 = vld [vmem:[%s1748_s1 + $0x28] sm:$0xff]  ;;  %v1121_v22 = vld [vmem:[%s1748_s1 + $0x30] sm:$0xff] }
   0x5   :  { %1330 = vmatprep.subr.bf16.mxu0 %v1401_v0  ;;  %v28_v16 = vsel %vm27_vm1, %v26_v11, %v14_v7  ;;  %1337 = vmatprep.subr.bf16.mxu1 %v1401_v0  ;;  %v1342_v21 = vpack.c.bf16 %v1120_v20, %v1119_v19  ;;  %v1122_v23 = vld [vmem:[%s1748_s1 + $0x38] sm:$0xff]  ;;  %v237_v24 = vld [vmem:[%s1749_s0 + $0x9] sm:$0x1]  ;;  %v238_v26 = vld [vmem:[%s1749_s0 + $0x11] sm:$0x1]  ;;  %v206_v11 = vlaneseq }
   0x6   :  { %v31_v17 = vsel %vm30_vm3, %v29_v14, %v28_v16  ;;  %v1345_v25 = vpack.c.bf16 %v1122_v23, %v1121_v22  ;;  %v249_v27 = vrot.slane %v237_v24, 7  ;;  %v236_v28 = vld [vmem:[%s1749_s0 + $0x1] sm:$0x1]  ;;  %v239_v29 = vld [vmem:[%s1749_s0 + $0x19] sm:$0x1]  ;;  %v251_v30 = vrot.slane %v238_v26, 6 }
   0x7   :  { %v34_v18 = vsel %vm33_vm5, %v32_v15, %v31_v17  ;;  %v253_v32 = vrot.slane %v239_v29, 5  ;;  %v455_v35 = vld [vmem:[%s1749_s0 + $0xa] sm:$0x1]  ;;  %v1131_v36 = vld [vmem:[%s1748_s1 + $0x40] sm:$0xff]  ;;  %v456_v38 = vld [vmem:[%s1749_s0 + $0x12] sm:$0x1] }
   0x8   :  { %1332 = vmatpush3.bf16.msra.mxu0 %v1331_v13  ;;  %v250_v31 = vsel %vm27_vm1, %v249_v27, %v236_v28  ;;  %v1132_v37 = vld [vmem:[%s1748_s1 + $0x48] sm:$0xff]  ;;  %v467_v39 = vrot.slane %v455_v35, 7  ;;  %v454_v40 = vld [vmem:[%s1749_s0 + $0x2] sm:$0x1]  ;;  %v1133_v42 = vld [vmem:[%s1748_s1 + $0x50] sm:$0xff]  ;;  %v469_v45 = vrot.slane %v456_v38, 6 }
   0x9   :  { %1341 = vmatprep.subr.bf16.mxu0 %v1401_v0  ;;  %v252_v33 = vsel %vm30_vm3, %v251_v30, %v250_v31  ;;  %v1356_v41 = vpack.c.bf16 %v1132_v37, %v1131_v36  ;;  %v1134_v43 = vld [vmem:[%s1748_s1 + $0x58] sm:$0xff]  ;;  %v1143_v53 = vld [vmem:[%s1748_s1 + $0x60] sm:$0xff]  ;;  %v1144_v54 = vld [vmem:[%s1748_s1 + $0x68] sm:$0xff]  ;;  %v1404_v9 = vmov 1966171168   ;;  %v207_v14 = vshrl.u32 %v206_v11, 7 }
   0xa   :  { %v254_v34 = vsel %vm33_vm5, %v253_v32, %v252_v33  ;;  %v457_v44 = vld [vmem:[%s1749_s0 + $0x1a] sm:$0x1]  ;;  %v468_v47 = vsel %vm27_vm1, %v467_v39, %v454_v40  ;;  %v1359_v49 = vpack.c.bf16 %v1134_v43, %v1133_v42  ;;  %v1370_v55 = vpack.c.bf16 %v1144_v54, %v1143_v53  ;;  %v1145_v58 = vld [vmem:[%s1748_s1 + $0x70] sm:$0xff]  ;;  %v673_v60 = vld [vmem:[%s1749_s0 + $0xb] sm:$0x1] }
   0xb   :  { %1226 = vmatmul.mubr.msk.f32.vlgmr.msra.gmra.mrb[0].mxu0 %vm35_vm6, %v34_v18  ;;  %v471_v50 = vrot.slane %v457_v44, 5  ;;  %v470_v51 = vsel %vm30_vm3, %v469_v45, %v468_v47  ;;  %v1146_v59 = vld [vmem:[%s1748_s1 + $0x78] sm:$0xff]  ;;  %v674_v62 = vld [vmem:[%s1749_s0 + $0x13] sm:$0x1]  ;;  %v685_v63 = vrot.slane %v673_v60, 7  ;;  %v204_v10 = vunpack.c.l.s4 %v1404_v9  ;;  %v1155_v22 = vld [vmem:[%s1748_s1 + $0x80] sm:$0xff] }
   0xc   :  { %1340 = vmatpush3.bf16.xpose.msk.msra.mxu1 %vm1457_vm4, %v1331_v13  ;;  %1247 = vmatprep.mubr.msk.f32.mxu0 %vm1402_vm0, %v1403_v4  ;;  %v1373_v61 = vpack.c.bf16 %v1146_v59, %v1145_v58  ;;  %v672_v1 = vld [vmem:[%s1749_s0 + $0x3] sm:$0x1]  ;;  %v675_v2 = vld [vmem:[%s1749_s0 + $0x1b] sm:$0x1]  ;;  %v687_v3 = vrot.slane %v674_v62, 6  ;;  %v1156_v23 = vld [vmem:[%s1748_s1 + $0x88] sm:$0xff] }
   0xd   :  { %1355 = vmatprep.subr.bf16.mxu1 %v1401_v0  ;;  %1343 = vmatpush3.bf16.msra.mxu0 %v1342_v21  ;;  %v472_v52 = vsel %vm33_vm5, %v471_v50, %v470_v51  ;;  %v686_v5 = vsel %vm27_vm1, %v685_v63, %v672_v1  ;;  %v689_v6 = vrot.slane %v675_v2, 5  ;;  %v205_v13 = vunpack.c.0.s8 %v204_v10  ;;  %v1113_v15 = vld [vmem:[%s1750_s2] ss:$0 sm:$0xff]  ;;  %v891_v20 = vld [vmem:[%s1749_s0 + $0xc] sm:$0x1]  ;;  %v1157_v31 = vld [vmem:[%s1748_s1 + $0x90] sm:$0xff] }
   0xe   :  { %1344 = vmatprep.subr.bf16.mxu0 %v1401_v0  ;;  %v688_v7 = vsel %vm30_vm3, %v687_v3, %v686_v5  ;;  %v892_v24 = vld [vmem:[%s1749_s0 + $0x14] sm:$0x1]  ;;  %v890_v27 = vld [vmem:[%s1749_s0 + $0x4] sm:$0x1]  ;;  %v1384_v28 = vpack.c.bf16 %v1156_v23, %v1155_v22  ;;  %v1158_v32 = vld [vmem:[%s1748_s1 + $0x98] sm:$0xff] }
   0xf   :  { %v690_v8 = vsel %vm33_vm5, %v689_v6, %v688_v7  ;;  %v1597_v18 = vsub.s32 %v205_v13, %v207_v14  ;;  %v893_v33 = vld [vmem:[%s1749_s0 + $0x1c] sm:$0x1]  ;;  %v1387_v40 = vpack.c.bf16 %v1158_v32, %v1157_v31  ;;  %v1125_v45 = vld [vmem:[%s1750_s2 + $0x1] ss:$0 sm:$0xff]  ;;  %v1149_v6 = vld [vmem:[%s1750_s2 + $0x3] ss:$0 sm:$0xff] }
  0x11   :  { %1346 = vmatpush3.bf16.msra.mxu0 %v1345_v25 }
  0x12   :  { %1347 = vmatprep.subr.bf16.mxu0 %v1401_v0 }
  0x14   :  { %1248 = vmatmul.mubr.msk.f32.vlgmr.msra.gmra.mrb[2].mxu0 %vm35_vm6, %v254_v34  ;;  %v905_v34 = vrot.slane %v892_v24, 6 }
  0x15   :  { %1258 = vmatprep.mubr.msk.f32.mxu0 %vm1402_vm0, %v1403_v4 }
  0x1a   :  { %1350 = vmatpush3.bf16.xpose.msk.msra.mxu0 %vm1457_vm4, %v1342_v21 }
  0x1b   :  { %1351 = vmatprep.subr.bf16.mxu0 %v1401_v0 }
  0x22   :  { %1354 = vmatpush3.bf16.xpose.msk.msra.mxu0 %vm1457_vm4, %v1345_v25  ;;  %v903_v25 = vrot.slane %v891_v20, 7 }
  0x23   :  { %1369 = vmatprep.subr.bf16.mxu0 %v1401_v0 }
  0x24   :  { %v904_v36 = vsel %vm27_vm1, %v903_v25, %v890_v27 }
  0x25   :  { %v906_v43 = vsel %vm30_vm3, %v905_v34, %v904_v36 }
  0xde   :  { %v104_v46 = vpop.f32.mrb[0].mxu0 }
  0xdf   :  { %v1227_v48 = vpop.f32.mrb[1].mxu0  ;;  %1237 = vmatmul.mubr.msk.f32.vlgmr.msra.gmra.mrb[0].mxu1 %vm115_vm2, %v104_v46 }
  0xe0   :  { %1357 = vmatpush3.bf16.msra.mxu1 %v1356_v41  ;;  %1269 = vmatprep.mubr.msk.f32.mxu1 %vm1402_vm0, %v1403_v4 }
  0xe1   :  { %1358 = vmatprep.subr.bf16.mxu1 %v1401_v0 }
  0xe4   :  { %1360 = vmatpush3.bf16.msra.mxu1 %v1359_v49 }
  0xe5   :  { %1361 = vmatprep.subr.bf16.mxu1 %v1401_v0 }
  0xe7   :  { %1270 = vmatmul.mubr.msk.f32.vlgmr.msra.gmra.mrb[2].mxu1 %vm35_vm6, %v472_v52  ;;  %v323_v56 = vpop.f32.mrb[2].mxu0 }
  0xe8   :  { %1280 = vmatprep.mubr.msk.f32.mxu1 %vm1402_vm0, %v1403_v4  ;;  %v1249_v57 = vpop.f32.mrb[3].mxu0  ;;  %1259 = vmatmul.mubr.msk.f32.vlgmr.msra.gmra.mrb[4].mxu0 %vm115_vm2, %v323_v56 }
  0xe9   :  { %1371 = vmatpush3.bf16.msra.mxu0 %v1370_v55  ;;  %1291 = vmatprep.mubr.msk.f32.mxu0 %vm1402_vm0, %v1403_v4 }
  0xea   :  { %1372 = vmatprep.subr.bf16.mxu0 %v1401_v0 }
  0xed   :  { %1364 = vmatpush3.bf16.xpose.msk.msra.mxu1 %vm1457_vm4, %v1356_v41  ;;  %1374 = vmatpush3.bf16.msra.mxu0 %v1373_v61  ;;  %v907_v41 = vrot.slane %v893_v33, 5 }
  0xee   :  { %1365 = vmatprep.subr.bf16.mxu1 %v1401_v0  ;;  %1375 = vmatprep.subr.bf16.mxu0 %v1401_v0 }
  0xef   :  { %v908_v44 = vsel %vm33_vm5, %v907_v41, %v906_v43 }
  0xf0   :  { %1292 = vmatmul.mubr.msk.f32.vlgmr.msra.gmra.mrb[6].mxu0 %vm35_vm6, %v690_v8 }
  0xf1   :  { %1302 = vmatprep.mubr.msk.f32.mxu0 %vm1402_vm0, %v1403_v4 }
  0xf5   :  { %1368 = vmatpush3.bf16.xpose.msk.msra.mxu1 %vm1457_vm4, %v1359_v49 }
  0xf6   :  { %1383 = vmatprep.subr.bf16.mxu1 %v1401_v0  ;;  %1378 = vmatpush3.bf16.xpose.msk.msra.mxu0 %vm1457_vm4, %v1370_v55  ;;  %v1137_v55 = vld [vmem:[%s1750_s2 + $0x2] ss:$0 sm:$0xff] }
  0xf7   :  { %1379 = vmatprep.subr.bf16.mxu0 %v1401_v0 }
  0xfe   :  { %1382 = vmatpush3.bf16.xpose.msk.msra.mxu0 %vm1457_vm4, %v1373_v61 }
 0x1b2   :  { %v197_v16 = vpop.f32.mrb[0].mxu1 }
 0x1b3   :  { %v198_v17 = vadd.f32 %v1113_v15, %v197_v16  ;;  %v1238_v19 = vpop.f32.mrb[1].mxu1 }
 0x1b4   :  { %v1161_v19 = vld [vmem:[%s1750_s2 + $0x4] ss:$0 sm:$0xff] }
 0x1b5   :  { %v201_v21 = vmax.f32 %v198_v17, 0.0 }
 0x1b7   :  { %v209_v26 = vrot.slane %v201_v21, %v1597_v18 }
 0x1b9   :  { %v210_v29 = vcombine.high %v209_v26, %v209_v26  ;;  %v217_v30 = vrot.slane %v209_v26, %v1597_v18 }
 0x1ba   :  { %v541_v35 = vpop.f32.mrb[2].mxu1 }
 0x1bb   :  { %v224_v37 = vrot.slane %v210_v29, %v1597_v18  ;;  %v225_v38 = vcombine.high %v217_v30, %v217_v30  ;;  %232 = vst.msk [vmem:[%s1751_s3] sm:$0x1] %vm231_vm7, %v217_v30  ;;  %v1271_v39 = vpop.f32.mrb[3].mxu1  ;;  %1281 = vmatmul.mubr.msk.f32.vlgmr.msra.gmra.mrb[4].mxu1 %vm115_vm2, %v541_v35  ;;  %v416_v46 = vpop.f32.mrb[4].mxu0 }
 0x1bc   :  { %1385 = vmatpush3.bf16.msra.mxu1 %v1384_v28  ;;  %1313 = vmatprep.mubr.msk.f32.mxu1 %vm1402_vm0, %v1403_v4  ;;  %v417_v47 = vadd.f32 %v1125_v45, %v416_v46  ;;  %v1260_v48 = vpop.f32.mrb[5].mxu0 }
 0x1bd   :  { %v226_v42 = vcombine.high %v224_v37, %v224_v37  ;;  %233 = vst.msk [vmem:[%s1751_s3 + $0x8] sm:$0x1] %vm231_vm7, %v224_v37  ;;  %234 = vst.msk [vmem:[%s1751_s3 + $0x10] sm:$0x1] %vm231_vm7, %v225_v38  ;;  %1386 = vmatprep.subr.bf16.mxu1 %v1401_v0 }
 0x1be   :  { %v420_v49 = vmax.f32 %v417_v47, 0.0 }
 0x1bf   :  { %235 = vst.msk [vmem:[%s1751_s3 + $0x18] sm:$0x1] %vm231_vm7, %v226_v42 }
 0x1c0   :  { %1388 = vmatpush3.bf16.msra.mxu1 %v1387_v40  ;;  %v428_v50 = vrot.slane %v420_v49, %v1597_v18 }
 0x1c1   :  { %1389 = vmatprep.subr.bf16.mxu1 %v1401_v0 }
 0x1c2   :  { %v429_v51 = vcombine.high %v428_v50, %v428_v50 }
 0x1c3   :  { %1314 = vmatmul.mubr.msk.f32.vlgmr.msra.gmra.mrb[6].mxu1 %vm35_vm6, %v908_v44  ;;  %v759_v52 = vpop.f32.mrb[6].mxu0 }
 0x1c4   :  { %1324 = vmatprep.mubr.msk.f32.mxu1 %vm1402_vm0, %v1403_v4  ;;  %v436_v4 = vrot.slane %v428_v50, %v1597_v18  ;;  %v443_v53 = vrot.slane %v429_v51, %v1597_v18  ;;  %v1293_v12 = vpop.f32.mrb[7].mxu0  ;;  %1303 = vmatmul.mubr.msk.f32.vlgmr.msra.gmra.mrb[8].mxu0 %vm115_vm2, %v759_v52 }
 0x1c6   :  { %450 = vst.msk [vmem:[%s1751_s3 + $0x1] sm:$0x1] %vm231_vm7, %v436_v4  ;;  %v445_v54 = vcombine.high %v443_v53, %v443_v53  ;;  %451 = vst.msk [vmem:[%s1751_s3 + $0x9] sm:$0x1] %vm231_vm7, %v443_v53 }
 0x1c8   :  { %453 = vst.msk [vmem:[%s1751_s3 + $0x19] sm:$0x1] %vm231_vm7, %v445_v54 }
 0x1c9   :  { %1392 = vmatpush3.bf16.xpose.msk.msra.mxu1 %vm1457_vm4, %v1384_v28 }
 0x1ca   :  { %1393 = vmatprep.subr.bf16.mxu1 %v1401_v0  ;;  %v444_v0 = vcombine.high %v436_v4, %v436_v4 }
 0x1cc   :  { %452 = vst.msk [vmem:[%s1751_s3 + $0x11] sm:$0x1] %vm231_vm7, %v444_v0 }
 0x1d1   :  { %1396 = vmatpush3.bf16.xpose.msk.msra.mxu1 %vm1457_vm4, %v1387_v40 }
 0x28e   :  { %v634_v56 = vpop.f32.mrb[4].mxu1 }
 0x28f   :  { %v635_v57 = vadd.f32 %v1137_v55, %v634_v56  ;;  %v1282_v58 = vpop.f32.mrb[5].mxu1 }
 0x291   :  { %v638_v59 = vmax.f32 %v635_v57, 0.0 }
 0x293   :  { %v646_v60 = vrot.slane %v638_v59, %v1597_v18 }
 0x295   :  { %v647_v61 = vcombine.high %v646_v60, %v646_v60  ;;  %v654_v62 = vrot.slane %v646_v60, %v1597_v18 }
 0x296   :  { %v977_v63 = vpop.f32.mrb[6].mxu1 }
 0x297   :  { %v661_v1 = vrot.slane %v647_v61, %v1597_v18  ;;  %v662_v2 = vcombine.high %v654_v62, %v654_v62  ;;  %668 = vst.msk [vmem:[%s1751_s3 + $0x2] sm:$0x1] %vm231_vm7, %v654_v62  ;;  %v1315_v3 = vpop.f32.mrb[7].mxu1  ;;  %1325 = vmatmul.mubr.msk.f32.vlgmr.msra.gmra.mrb[8].mxu1 %vm115_vm2, %v977_v63  ;;  %v852_v7 = vpop.f32.mrb[8].mxu0 }
 0x298   :  { %v853_v8 = vadd.f32 %v1149_v6, %v852_v7  ;;  %v1304_v9 = vpop.f32.mrb[9].mxu0 }
 0x299   :  { %v663_v5 = vcombine.high %v661_v1, %v661_v1  ;;  %669 = vst.msk [vmem:[%s1751_s3 + $0xa] sm:$0x1] %vm231_vm7, %v661_v1  ;;  %670 = vst.msk [vmem:[%s1751_s3 + $0x12] sm:$0x1] %vm231_vm7, %v662_v2 }
 0x29a   :  { %v856_v10 = vmax.f32 %v853_v8, 0.0 }
 0x29b   :  { %671 = vst.msk [vmem:[%s1751_s3 + $0x1a] sm:$0x1] %vm231_vm7, %v663_v5 }
 0x29c   :  { %v864_v11 = vrot.slane %v856_v10, %v1597_v18 }
 0x29e   :  { %v865_v13 = vcombine.high %v864_v11, %v864_v11  ;;  %v872_v14 = vrot.slane %v864_v11, %v1597_v18 }
 0x2a0   :  { %v879_v15 = vrot.slane %v865_v13, %v1597_v18  ;;  %v880_v16 = vcombine.high %v872_v14, %v872_v14  ;;  %886 = vst.msk [vmem:[%s1751_s3 + $0x3] sm:$0x1] %vm231_vm7, %v872_v14 }
 0x2a2   :  { %v881_v17 = vcombine.high %v879_v15, %v879_v15  ;;  %887 = vst.msk [vmem:[%s1751_s3 + $0xb] sm:$0x1] %vm231_vm7, %v879_v15  ;;  %888 = vst.msk [vmem:[%s1751_s3 + $0x13] sm:$0x1] %vm231_vm7, %v880_v16 }
 0x2a4   :  { %889 = vst.msk [vmem:[%s1751_s3 + $0x1b] sm:$0x1] %vm231_vm7, %v881_v17 }
 0x36a   :  { %v1070_v20 = vpop.f32.mrb[8].mxu1 }
 0x36b   :  { %v1071_v21 = vadd.f32 %v1161_v19, %v1070_v20  ;;  %v1326_v22 = vpop.f32.mrb[9].mxu1 }
 0x36d   :  { %v1074_v23 = vmax.f32 %v1071_v21, 0.0 }
 0x36f   :  { %v1082_v24 = vrot.slane %v1074_v23, %v1597_v18 }
 0x371   :  { %v1083_v25 = vcombine.high %v1082_v24, %v1082_v24  ;;  %v1090_v26 = vrot.slane %v1082_v24, %v1597_v18 }
 0x373   :  { %v1097_v27 = vrot.slane %v1083_v25, %v1597_v18  ;;  %v1098_v28 = vcombine.high %v1090_v26, %v1090_v26  ;;  %1104 = vst.msk [vmem:[%s1751_s3 + $0x4] sm:$0x1] %vm231_vm7, %v1090_v26 }
 0x375   :  { %v1099_v29 = vcombine.high %v1097_v27, %v1097_v27  ;;  %1105 = vst.msk [vmem:[%s1751_s3 + $0xc] sm:$0x1] %vm231_vm7, %v1097_v27  ;;  %1106 = vst.msk [vmem:[%s1751_s3 + $0x14] sm:$0x1] %vm231_vm7, %v1098_v28 }
 0x377   :  { %1107 = vst.msk [vmem:[%s1751_s3 + $0x1c] sm:$0x1] %vm231_vm7, %v1099_v29 }

</bundles_post_ra>
